<compile_context>
chip_gen: v5e
topology: v5e:2x2
jax: 0.10.0
libtpu: 0.0.40
codegen_flags: <defaults>
</compile_context>

<pallas_src>
import jax
import jax.numpy as jnp
from jax.experimental import pallas as pl
from jax.experimental.pallas import tpu as pltpu


_LANE = 128
_SUBLANE = 8


def _round_up(x: int, m: int) -> int:
    return ((x + m - 1) // m) * m


def _pick_tile(dim: int, target: int, align: int) -> int:
    """Largest tile <= target that divides `dim` and is a multiple of `align`;
    the full dim if it is already <= target."""
    if dim <= target:
        return dim
    t = (target // align) * align
    while t >= align:
        if dim % t == 0:
            return t
        t -= align
    # TODO(synk): masked tail blocks (pl.cdiv grids) not implemented; fall back
    #             to the full dimension for pathological non-divisible dims.
    return dim


# ---------------------------------------------------------------------------
# Fused whole-block kernel: one pallas_call for the entire SkipBlock.
# Weights/biases are VMEM-resident; all `values` intermediates stay in
# vregs/VMEM; grid is over M only.
# ---------------------------------------------------------------------------
def _make_fused_block_kernel(module_names, reception_skips, relus):
    n_layers = len(module_names)

    def kernel(*refs):
        x_ref = refs[0]
        o_ref = refs[-1]
        wb_refs = refs[1:-1]

        data = x_ref[...].astype(jnp.float32)
        values = {'BLOCK_INPUT': data}
        for idx in range(n_layers):
            name = module_names[idx]
            w_ref = wb_refs[2 * idx]
            b_ref = wb_refs[2 * idx + 1]
            # Sum of incoming skip tensors (f32, VPU) — stays on-chip.
            for sender in reception_skips.get(name, ()):
                data = data + values[sender]
            w = w_ref[...]
            # Feed the MXU native-dtype operands (bf16-native MXU); keep the
            # f32 accumulation via preferred_element_type.
            operand = data if w.dtype == jnp.float32 else data.astype(w.dtype)
            y = jnp.dot(operand, w, preferred_element_type=jnp.float32)
            y = y + b_ref[...].astype(jnp.float32)
            if relus[idx]:
                y = jnp.maximum(y, 0.0)
            values[name] = y
            data = y
        o_ref[...] = data.astype(o_ref.dtype)

    return kernel


# ---------------------------------------------------------------------------
# Per-layer fallback: fused "skip-sum + matmul + bias (+ relu)" kernel,
# tiled over (M, N, K) with an f32 accumulator scratch.
# ---------------------------------------------------------------------------
def _make_skip_linear_kernel(n_skips: int, relu: bool):
    def kernel(*refs):
        x_ref = refs[0]
        skip_refs = refs[1:1 + n_skips]
        w_ref, b_ref, o_ref, acc_ref = refs[1 + n_skips:]

        @pl.when(pl.program_id(2) == 0)
        def _():
            acc_ref[...] = jnp.zeros_like(acc_ref)

        # Skip-connection sum in f32 (VPU), then cast the summed tile to the
        # weight dtype so the MXU runs at its native (bf16) rate.
        x = x_ref[...].astype(jnp.float32)
        for s_ref in skip_refs:
            x = x + s_ref[...].astype(jnp.float32)
        w = w_ref[...]
        operand = x if w.dtype == jnp.float32 else x.astype(w.dtype)
        acc_ref[...] += jnp.dot(operand, w, preferred_element_type=jnp.float32)

        @pl.when(pl.program_id(2) == pl.num_programs(2) - 1)
        def _():
            y = acc_ref[...] + b_ref[...].astype(jnp.float32)
            if relu:
                y = jnp.maximum(y, 0.0)
            o_ref[...] = y.astype(o_ref.dtype)

    return kernel


def skip_linear(x, skips, w, b, *, relu=False, tm=512, tn=512, tk=512):
    """y = act((x + sum(skips)) @ w + b) as a single fused pallas_call."""
    M, K = x.shape
    Kw, N = w.shape
    assert K == Kw, (K, Kw)
    skips = tuple(skips)
    for s in skips:
        assert s.shape == x.shape, (s.shape, x.shape)

    tm = _pick_tile(M, tm, _SUBLANE)
    tn = _pick_tile(N, tn, _LANE)
    tk = _pick_tile(K, tk, _LANE)

    # Hoist the skip-sum out of the kernel when it would otherwise be
    # re-DMA'd and re-added once per N tile (redundant (1+n_skips)x HBM reads).
    if skips and (N // tn) > 1:
        for s in skips:
            x = x + s
        skips = ()

    grid = (M // tm, N // tn, K // tk)
    b2 = b.reshape(1, N)   # lane-dense 2D bias, no in-kernel reshapes

    data_spec = pl.BlockSpec((tm, tk), lambda i, j, k: (i, k))
    in_specs = (
        [data_spec]                                            # x
        + [data_spec] * len(skips)                             # skip tensors
        + [pl.BlockSpec((tk, tn), lambda i, j, k: (k, j)),     # W
           pl.BlockSpec((1, tn), lambda i, j, k: (0, j))]      # bias
    )
    out_spec = pl.BlockSpec((tm, tn), lambda i, j, k: (i, j))

    return pl.pallas_call(
        _make_skip_linear_kernel(len(skips), relu),
        out_shape=jax.ShapeDtypeStruct((M, N), x.dtype),
        grid=grid,
        in_specs=in_specs,
        out_specs=out_spec,
        scratch_shapes=[pltpu.VMEM((tm, tn), jnp.float32)],
        compiler_params=pltpu.CompilerParams(
            dimension_semantics=("parallel", "parallel", "arbitrary")),
    )(x, *skips, w, b2)


class PallasLinear:
    """nn.Linear (+ optional ReLU) sub-module for the Pallas SkipBlock."""

    def __init__(self, w, b, relu=False):
        self.w = w
        self.b = b
        self.relu = relu
        K, N = w.shape
        self.in_features, self.out_features = K, N
        Kp, Np = _round_up(K, _LANE), _round_up(N, _LANE)
        # Zero-padded, lane-dense copies used by the fused whole-block kernel.
        if (Kp, Np) != (K, N):
            self.w_pad = jnp.pad(w, ((0, Kp - K), (0, Np - N)))
        else:
            self.w_pad = w
        b_pad = jnp.pad(b, (0, Np - N)) if Np != N else b
        self.b_pad = b_pad.reshape(1, Np)

    def __call__(self, data, skips=()):
        return skip_linear(data, tuple(skips), self.w, self.b, relu=self.relu)


class SkipBlock:
    """Pallas equivalent of the PyTorch SkipBlock forward."""

    def __init__(self, modules, module_names, reception_skips,
                 *, vmem_budget_bytes=24 << 20):
        self.modules = list(modules)
        self.module_names = list(module_names)
        self.reception_skips = {k: list(v) for k, v in reception_skips.items()}
        # Conservative resident-VMEM budget (fits the 32 MiB default scoped
        # limit on v5e/v6e and v7x's smaller 64 MiB physical VMEM).
        self.vmem_budget_bytes = vmem_budget_bytes

    # -- dispatch -----------------------------------------------------------
    def __call__(self, data):
        if self._can_fuse(data):
            return self._fused_forward(data)
        return self._layerwise_forward(data)

    # -- fused whole-block path ---------------------------------------------
    def _can_fuse(self, data):
        if not all(isinstance(m, PallasLinear) for m in self.modules):
            return False
        M, K = data.shape
        tm = min(_round_up(M, _SUBLANE), 512)
        bytes_needed = 0
        for m in self.modules:
            bytes_needed += m.w_pad.size * m.w_pad.dtype.itemsize
            bytes_needed += m.b_pad.size * m.b_pad.dtype.itemsize
        widths = [_round_up(K, _LANE)] + [
            _round_up(m.out_features, _LANE) for m in self.modules]
        # f32 intermediates (worst case: all `values` live simultaneously).
        bytes_needed += sum(tm * w_ * 4 for w_ in widths)
        # Double-buffered streamed input/output tiles.
        bytes_needed += 2 * (tm * widths[0] + tm * widths[-1]) * 4
        return 2 * bytes_needed <= self.vmem_budget_bytes   # 2x safety margin

    def _fused_forward(self, x):
        M, K = x.shape
        out_dtype = x.dtype
        Mp = _round_up(M, _SUBLANE)
        Kp = _round_up(K, _LANE)
        if (Mp, Kp) != (M, K):
            # Zero padding is inert: padded weight rows/cols are zero and
            # relu(0 + 0) = 0, so valid outputs are unchanged.
            x = jnp.pad(x, ((0, Mp - M), (0, Kp - K)))
        tm = _pick_tile(Mp, 512, _SUBLANE)

        n_last = self.modules[-1].out_features
        np_last = _round_up(n_last, _LANE)

        names = tuple(self.module_names)
        routing = {k: tuple(v) for k, v in self.reception_skips.items()}
        relus = tuple(m.relu for m in self.modules)
        kernel = _make_fused_block_kernel(names, routing, relus)

        args = [x]
        in_specs = [pl.BlockSpec((tm, Kp), lambda i: (i, 0))]
        for m in self.modules:
            kp, np_ = m.w_pad.shape
            args += [m.w_pad, m.b_pad]
            in_specs += [pl.BlockSpec((kp, np_), lambda i: (0, 0)),   # resident W
                         pl.BlockSpec((1, np_), lambda i: (0, 0))]    # resident b
        out_spec = pl.BlockSpec((tm, np_last), lambda i: (i, 0))

        out = pl.pallas_call(
            kernel,
            out_shape=jax.ShapeDtypeStruct((Mp, np_last), out_dtype),
            grid=(Mp // tm,),
            in_specs=in_specs,
            out_specs=out_spec,
            compiler_params=pltpu.CompilerParams(
                dimension_semantics=("parallel",)),
        )(*args)
        return out[:M, :n_last]

    # -- per-layer fallback path --------------------------------------------
    def _layerwise_forward(self, data):
        values = {'BLOCK_INPUT': data}
        for name, module in zip(self.module_names, self.modules):
            skips = tuple(values[s] for s in self.reception_skips.get(name, ()))
            data = module(data, skips)
            values[name] = data
        return data


if __name__ == "__main__":
    key = jax.random.PRNGKey(0)
    batch, hidden = 8, 32

    kx, kw1, kw2, kw3, kb1, kb2, kb3 = jax.random.split(key, 7)
    x = jax.random.normal(kx, (batch, hidden), dtype=jnp.float32)

    scale = hidden ** -0.5
    w1 = jax.random.normal(kw1, (hidden, hidden), jnp.float32) * scale
    w2 = jax.random.normal(kw2, (hidden, hidden), jnp.float32) * scale
    w3 = jax.random.normal(kw3, (hidden, hidden), jnp.float32) * scale
    b1 = jax.random.normal(kb1, (hidden,), jnp.float32) * 0.1
    b2 = jax.random.normal(kb2, (hidden,), jnp.float32) * 0.1
    b3 = jax.random.normal(kb3, (hidden,), jnp.float32) * 0.1

    module_names = ["fc1", "fc2", "fc3"]
    # ResNet/DenseNet-style routing: fc2 receives the block input,
    # fc3 receives both fc1's output and the block input.
    reception_skips = {"fc2": ["BLOCK_INPUT"], "fc3": ["fc1", "BLOCK_INPUT"]}
    modules = [
        PallasLinear(w1, b1, relu=True),
        PallasLinear(w2, b2, relu=True),
        PallasLinear(w3, b3, relu=False),
    ]

    # Pure-JAX reference of the SkipBlock forward.
    def ref_forward(data):
        params = {"fc1": (w1, b1, True), "fc2": (w2, b2, True), "fc3": (w3, b3, False)}
        values = {'BLOCK_INPUT': data}
        for name in module_names:
            for sender in reception_skips.get(name, ()):
                data = data + values[sender]
            w, b, relu = params[name]
            data = jnp.dot(data, w, preferred_element_type=jnp.float32) + b
            if relu:
                data = jnp.maximum(data, 0.0)
            values[name] = data
        return data

    ref = ref_forward(x)

    # 1) Primary path: fully fused single-kernel SkipBlock.
    block = SkipBlock(modules, module_names, reception_skips)
    out = block(x)
    jax.block_until_ready(out)
    assert out.shape == ref.shape, (out.shape, ref.shape)
    assert out.dtype == ref.dtype, (out.dtype, ref.dtype)
    assert jnp.allclose(out, ref, rtol=1e-2, atol=1e-2), \
        float(jnp.max(jnp.abs(out - ref)))

    # 2) Fallback path: per-layer fused skip_linear kernels (forced by a zero
    #    fusion budget) — must produce the same result.
    block_lw = SkipBlock(modules, module_names, reception_skips,
                         vmem_budget_bytes=0)
    out_lw = block_lw(x)
    jax.block_until_ready(out_lw)
    assert out_lw.shape == ref.shape
    assert jnp.allclose(out_lw, ref, rtol=1e-2, atol=1e-2), \
        float(jnp.max(jnp.abs(out_lw - ref)))

    print("KERNEL_OK")
</pallas_src>

<mosaic_0001>
module attributes {stable_mosaic.version = 11 : i64} {
  func.func @kernel(%arg0: i32, %arg1: memref<8x128xf32, #tpu.memory_space<vmem>>, %arg2: memref<128x128xf32, #tpu.memory_space<vmem>>, %arg3: memref<1x128xf32, #tpu.memory_space<vmem>>, %arg4: memref<128x128xf32, #tpu.memory_space<vmem>>, %arg5: memref<1x128xf32, #tpu.memory_space<vmem>>, %arg6: memref<128x128xf32, #tpu.memory_space<vmem>>, %arg7: memref<1x128xf32, #tpu.memory_space<vmem>>, %arg8: memref<8x128xf32, #tpu.memory_space<vmem>>) attributes {dimension_semantics = [#tpu.dimension_semantics<parallel>], iteration_bounds = array<i64: 1>, scalar_prefetch = 0 : i64, scratch_operands = 0 : i64, tpu.core_type = #tpu.core_type<tc>, window_params = [{transform_indices = @transform_0, window_bounds = array<i64: 8, 128>}, {pipeline_mode = #tpu.pipeline_mode<synchronous>, transform_indices = @transform_1, window_bounds = array<i64: 128, 128>}, {pipeline_mode = #tpu.pipeline_mode<synchronous>, transform_indices = @transform_2, window_bounds = array<i64: 1, 128>}, {pipeline_mode = #tpu.pipeline_mode<synchronous>, transform_indices = @transform_3, window_bounds = array<i64: 128, 128>}, {pipeline_mode = #tpu.pipeline_mode<synchronous>, transform_indices = @transform_4, window_bounds = array<i64: 1, 128>}, {pipeline_mode = #tpu.pipeline_mode<synchronous>, transform_indices = @transform_5, window_bounds = array<i64: 128, 128>}, {pipeline_mode = #tpu.pipeline_mode<synchronous>, transform_indices = @transform_6, window_bounds = array<i64: 1, 128>}, {transform_indices = @transform_7, window_bounds = array<i64: 8, 128>}]} {
    %c0 = arith.constant 0 : index
    %c0_0 = arith.constant 0 : index
    %0 = vector.load %arg1[%c0, %c0_0] : memref<8x128xf32, #tpu.memory_space<vmem>>, vector<8x128xf32>
    %c0_1 = arith.constant 0 : index
    %c0_2 = arith.constant 0 : index
    %1 = vector.load %arg2[%c0_1, %c0_2] : memref<128x128xf32, #tpu.memory_space<vmem>>, vector<128x128xf32>
    %cst = arith.constant dense<0.000000e+00> : vector<8x128xf32>
    %2 = tpu.matmul %0, %1, %cst {dimension_numbers = #tpu.dot_dimension_numbers<[1], [0], [0], [1], [0, 0, 1, 1], [], []>} : vector<8x128xf32>, vector<128x128xf32>, vector<8x128xf32> -> vector<8x128xf32>
    %c0_3 = arith.constant 0 : index
    %c0_4 = arith.constant 0 : index
    %3 = vector.load %arg3[%c0_3, %c0_4] : memref<1x128xf32, #tpu.memory_space<vmem>>, vector<1x128xf32>
    %4 = vector.broadcast %3 : vector<1x128xf32> to vector<8x128xf32>
    %5 = arith.addf %2, %4 : vector<8x128xf32>
    %cst_5 = arith.constant 0.000000e+00 : f32
    %6 = vector.broadcast %cst_5 : f32 to vector<8x128xf32>
    %7 = arith.maximumf %5, %6 : vector<8x128xf32>
    %8 = arith.addf %7, %0 : vector<8x128xf32>
    %c0_6 = arith.constant 0 : index
    %c0_7 = arith.constant 0 : index
    %9 = vector.load %arg4[%c0_6, %c0_7] : memref<128x128xf32, #tpu.memory_space<vmem>>, vector<128x128xf32>
    %cst_8 = arith.constant dense<0.000000e+00> : vector<8x128xf32>
    %10 = tpu.matmul %8, %9, %cst_8 {dimension_numbers = #tpu.dot_dimension_numbers<[1], [0], [0], [1], [0, 0, 1, 1], [], []>} : vector<8x128xf32>, vector<128x128xf32>, vector<8x128xf32> -> vector<8x128xf32>
    %c0_9 = arith.constant 0 : index
    %c0_10 = arith.constant 0 : index
    %11 = vector.load %arg5[%c0_9, %c0_10] : memref<1x128xf32, #tpu.memory_space<vmem>>, vector<1x128xf32>
    %12 = vector.broadcast %11 : vector<1x128xf32> to vector<8x128xf32>
    %13 = arith.addf %10, %12 : vector<8x128xf32>
    %cst_11 = arith.constant 0.000000e+00 : f32
    %14 = vector.broadcast %cst_11 : f32 to vector<8x128xf32>
    %15 = arith.maximumf %13, %14 : vector<8x128xf32>
    %16 = arith.addf %15, %7 : vector<8x128xf32>
    %17 = arith.addf %16, %0 : vector<8x128xf32>
    %c0_12 = arith.constant 0 : index
    %c0_13 = arith.constant 0 : index
    %18 = vector.load %arg6[%c0_12, %c0_13] : memref<128x128xf32, #tpu.memory_space<vmem>>, vector<128x128xf32>
    %cst_14 = arith.constant dense<0.000000e+00> : vector<8x128xf32>
    %19 = tpu.matmul %17, %18, %cst_14 {dimension_numbers = #tpu.dot_dimension_numbers<[1], [0], [0], [1], [0, 0, 1, 1], [], []>} : vector<8x128xf32>, vector<128x128xf32>, vector<8x128xf32> -> vector<8x128xf32>
    %c0_15 = arith.constant 0 : index
    %c0_16 = arith.constant 0 : index
    %20 = vector.load %arg7[%c0_15, %c0_16] : memref<1x128xf32, #tpu.memory_space<vmem>>, vector<1x128xf32>
    %21 = vector.broadcast %20 : vector<1x128xf32> to vector<8x128xf32>
    %22 = arith.addf %19, %21 : vector<8x128xf32>
    %c0_17 = arith.constant 0 : index
    %c0_18 = arith.constant 0 : index
    %23 = vector.load %arg8[%c0_17, %c0_18] : memref<8x128xf32, #tpu.memory_space<vmem>>, vector<8x128xf32>
    tpu.vector_store %arg8[%c0_17, %c0_18], %22 {strides = array<i32>} : memref<8x128xf32, #tpu.memory_space<vmem>>, vector<8x128xf32>,
    return
  }
  func.func @transform_0(%arg0: i32) -> (i32, i32) {
    %c0_i32 = arith.constant 0 : i32
    %c0_i32_0 = arith.constant 0 : i32
    return %arg0, %c0_i32 : i32, i32
  }
  func.func @transform_1(%arg0: i32) -> (i32, i32) {
    %c0_i32 = arith.constant 0 : i32
    %c0_i32_0 = arith.constant 0 : i32
    %c0_i32_1 = arith.constant 0 : i32
    return %c0_i32, %c0_i32_0 : i32, i32
  }
  func.func @transform_2(%arg0: i32) -> (i32, i32) {
    %c0_i32 = arith.constant 0 : i32
    %c0_i32_0 = arith.constant 0 : i32
    %c0_i32_1 = arith.constant 0 : i32
    return %c0_i32, %c0_i32_0 : i32, i32
  }
  func.func @transform_3(%arg0: i32) -> (i32, i32) {
    %c0_i32 = arith.constant 0 : i32
    %c0_i32_0 = arith.constant 0 : i32
    %c0_i32_1 = arith.constant 0 : i32
    return %c0_i32, %c0_i32_0 : i32, i32
  }
  func.func @transform_4(%arg0: i32) -> (i32, i32) {
    %c0_i32 = arith.constant 0 : i32
    %c0_i32_0 = arith.constant 0 : i32
    %c0_i32_1 = arith.constant 0 : i32
    return %c0_i32, %c0_i32_0 : i32, i32
  }
  func.func @transform_5(%arg0: i32) -> (i32, i32) {
    %c0_i32 = arith.constant 0 : i32
    %c0_i32_0 = arith.constant 0 : i32
    %c0_i32_1 = arith.constant 0 : i32
    return %c0_i32, %c0_i32_0 : i32, i32
  }
  func.func @transform_6(%arg0: i32) -> (i32, i32) {
    %c0_i32 = arith.constant 0 : i32
    %c0_i32_0 = arith.constant 0 : i32
    %c0_i32_1 = arith.constant 0 : i32
    return %c0_i32, %c0_i32_0 : i32, i32
  }
  func.func @transform_7(%arg0: i32) -> (i32, i32) {
    %c0_i32 = arith.constant 0 : i32
    %c0_i32_0 = arith.constant 0 : i32
    return %arg0, %c0_i32 : i32, i32
  }
}

</mosaic_0001>

<bundles_post_ra>
// kernel: tpu_custom_call.1
= control target key start
LH: loop header
LB: loop body
LE: loop exit
PB: predicated region body
PF: predicated region fallthrough
CT: control target
= control target key end

     0   :  { %12 = vsyncpa [#allocation3], 0  ;;  %s443_s0 = inlined_call_operand.hbm [shape: f32[8,128], index: 0, kind: input, shape index: {}]   ;;  %s444_s1 = inlined_call_operand.hbm [shape: f32[128,128], index: 1, kind: input, shape index: {}]   ;;  %s445_s2 = inlined_call_operand.vmem [shape: f32[1,128], index: 2, kind: input, shape index: {}]   ;;  %s446_s3 = inlined_call_operand.hbm [shape: f32[128,128], index: 3, kind: input, shape index: {}]   ;;  %s447_s4 = inlined_call_operand.vmem [shape: f32[1,128], index: 4, kind: input, shape index: {}]   ;;  %s448_s5 = inlined_call_operand.hbm [shape: f32[128,128], index: 5, kind: input, shape index: {}]   ;;  %s449_s6 = inlined_call_operand.vmem [shape: f32[1,128], index: 6, kind: input, shape index: {}]   ;;  %s450_s7 = inlined_call_operand.hbm [shape: f32[8,128], index: 7, kind: output, shape index: {}]  }
   0x1   :  { %13 = vsyncpa [#allocation6], 0 }
   0x2   :  { %14 = vsyncpa [#allocation9], 0  ;;  %s31_s26 = sshll.u32 %s444_s1, 4  ;;  %s32_s26 = int_to_ptr.hbm [resolvable:$true] %s31_s26 }
   0x3   :  { %15 = vsyncpa [#allocation4], 0  ;;  %s372_s27 = smov [#allocation5]   ;;  %s21_s8 = sshll.u32 %s443_s0, 4  ;;  %s22_s8 = int_to_ptr.hbm [resolvable:$true] %s21_s8 }
   0x4   :  { %s33_s28 = sshll.u32 %s372_s27, 4  ;;  %s373_s9 = smov 128   ;;  %s34_s28 = int_to_ptr.vmem [resolvable:$true] %s33_s28 }
   0x5   :  { %s374_s10 = smov 8   ;;  %s375_s11 = smov [#allocation2]  }
   0x6   :  { %39 = dma.hbm_to_vmem [thread:$0]  %s32_s26, 2048, %s34_s28, [#allocation6], %s373_s9, %s373_s9, %s374_s10  }
   0x7   :  { %s23_s12 = sshll.u32 %s375_s11, 4  ;;  %s46_s15 = sshll.u32 %s446_s3, 4  ;;  %s24_s12 = int_to_ptr.vmem [resolvable:$true] %s23_s12  ;;  %s47_s15 = int_to_ptr.hbm [resolvable:$true] %s46_s15 }
   0x8   :  { %26 = dma.hbm_to_vmem [thread:$0]  %s22_s8, 128, %s24_s12, [#allocation3]  }
   0x9   :  { %s61_s17 = sshll.u32 %s448_s5, 4  ;;  %s376_s18 = smov [#allocation7]   ;;  %s62_s17 = int_to_ptr.hbm [resolvable:$true] %s61_s17 }
   0xa   :  { %s48_s19 = sshll.u32 %s376_s18, 4  ;;  %s377_s0 = smov [#allocation8]   ;;  %s49_s19 = int_to_ptr.vmem [resolvable:$true] %s48_s19 }
   0xb   :  { %54 = dma.hbm_to_vmem [thread:$0]  %s47_s15, 2048, %s49_s19, [#allocation6], %s373_s9, %s373_s9, %s374_s10  }
   0xc   :  { %s63_s20 = sshll.u32 %s377_s0, 4  ;;  %s64_s20 = int_to_ptr.vmem [resolvable:$true] %s63_s20 }
   0xd   :  { %69 = dma.hbm_to_vmem [thread:$0]  %s62_s17, 2048, %s64_s20, [#allocation9], %s373_s9, %s373_s9, %s374_s10  }
   0xe   :  { %364 = dma.done.wait [#allocation3], 128  }
   0xf   :  { %365 = vsyncadd [#allocation3], 4294967168 }
  0x10   :  { %366 = dma.done.wait [#allocation6], 4096  }
  0x11   :  { %367 = vsyncadd [#allocation6], 4294963200 }
  0x12   :  { %368 = dma.done.wait [#allocation9], 2048  }
  0x13   :  { %369 = vsyncadd [#allocation9], 4294965248  ;;  %v104_v0 = vld [vmem:[#allocation5 + $0x78] sm:$0xff]  ;;  %v103_v1 = vld [vmem:[#allocation5 + $0x70] sm:$0xff]  ;;  %s378_s24 = smov [#allocation10]   ;;  %s222_s28 = sshll.u32 %s450_s7, 4  ;;  %s223_s28 = int_to_ptr.hbm [resolvable:$true] %s222_s28 }
  0x14   :  { %109 = vmatpush.msra.mxu0 %v104_v0  ;;  %v102_v2 = vld [vmem:[#allocation5 + $0x68] sm:$0xff]  ;;  %v101_v3 = vld [vmem:[#allocation5 + $0x60] sm:$0xff]  ;;  %v146_v4 = vld [vmem:[#allocation7 + $0x78] sm:$0xff]  ;;  %s220_s25 = sshll.u32 %s378_s24, 4  ;;  %s221_s25 = int_to_ptr.vmem [resolvable:$true] %s220_s25 }
  0x15   :  { %v100_v5 = vld [vmem:[#allocation5 + $0x58] sm:$0xff]  ;;  %151 = vmatpush.msra.mxu1 %v146_v4  ;;  %v145_v6 = vld [vmem:[#allocation7 + $0x70] sm:$0xff]  ;;  %v144_v7 = vld [vmem:[#allocation7 + $0x68] sm:$0xff] }
  0x16   :  { %110 = vmatpush.msra.mxu0 %v103_v1  ;;  %v99_v8 = vld [vmem:[#allocation5 + $0x50] sm:$0xff]  ;;  %v143_v9 = vld [vmem:[#allocation7 + $0x60] sm:$0xff]  ;;  %v98_v10 = vld [vmem:[#allocation5 + $0x48] sm:$0xff] }
  0x17   :  { %152 = vmatpush.msra.mxu1 %v145_v6  ;;  %v142_v11 = vld [vmem:[#allocation7 + $0x58] sm:$0xff]  ;;  %v97_v12 = vld [vmem:[#allocation5 + $0x40] sm:$0xff]  ;;  %v141_v13 = vld [vmem:[#allocation7 + $0x50] sm:$0xff] }
  0x18   :  { %111 = vmatpush.msra.mxu0 %v102_v2  ;;  %v96_v14 = vld [vmem:[#allocation5 + $0x38] sm:$0xff]  ;;  %v140_v15 = vld [vmem:[#allocation7 + $0x48] sm:$0xff]  ;;  %v95_v16 = vld [vmem:[#allocation5 + $0x30] sm:$0xff] }
  0x19   :  { %153 = vmatpush.msra.mxu1 %v144_v7  ;;  %v139_v17 = vld [vmem:[#allocation7 + $0x40] sm:$0xff]  ;;  %v94_v18 = vld [vmem:[#allocation5 + $0x28] sm:$0xff]  ;;  %v138_v19 = vld [vmem:[#allocation7 + $0x38] sm:$0xff] }
  0x1a   :  { %112 = vmatpush.msra.mxu0 %v101_v3  ;;  %v93_v20 = vld [vmem:[#allocation5 + $0x20] sm:$0xff]  ;;  %v137_v21 = vld [vmem:[#allocation7 + $0x30] sm:$0xff]  ;;  %v92_v22 = vld [vmem:[#allocation5 + $0x18] sm:$0xff] }
  0x1b   :  { %154 = vmatpush.msra.mxu1 %v143_v9  ;;  %v136_v23 = vld [vmem:[#allocation7 + $0x28] sm:$0xff]  ;;  %v91_v24 = vld [vmem:[#allocation5 + $0x10] sm:$0xff]  ;;  %v135_v25 = vld [vmem:[#allocation7 + $0x20] sm:$0xff] }
  0x1c   :  { %113 = vmatpush.msra.mxu0 %v100_v5  ;;  %v90_v26 = vld [vmem:[#allocation5 + $0x8] sm:$0xff]  ;;  %v89_v27 = vld [vmem:[#allocation5] sm:$0xff]  ;;  %v88_v28 = vld [vmem:[#allocation2] sm:$0xff] }
  0x1d   :  { %155 = vmatpush.msra.mxu1 %v142_v11  ;;  %v134_v29 = vld [vmem:[#allocation7 + $0x18] sm:$0xff]  ;;  %v133_v30 = vld [vmem:[#allocation7 + $0x10] sm:$0xff]  ;;  %v132_v31 = vld [vmem:[#allocation7 + $0x8] sm:$0xff] }
  0x1e   :  { %114 = vmatpush.msra.mxu0 %v99_v8  ;;  %v131_v32 = vld [vmem:[#allocation7] sm:$0xff]  ;;  %v189_v33 = vld [vmem:[#allocation8 + $0x78] sm:$0xff]  ;;  %v188_v34 = vld [vmem:[#allocation8 + $0x70] sm:$0xff] }
  0x1f   :  { %156 = vmatpush.msra.mxu1 %v141_v13  ;;  %194 = vmatpush.msra.mxu2 %v189_v33  ;;  %v187_v35 = vld [vmem:[#allocation8 + $0x68] sm:$0xff]  ;;  %v186_v36 = vld [vmem:[#allocation8 + $0x60] sm:$0xff]  ;;  %v185_v37 = vld [vmem:[#allocation8 + $0x58] sm:$0xff] }
  0x20   :  { %115 = vmatpush.msra.mxu0 %v98_v10  ;;  %v184_v38 = vld [vmem:[#allocation8 + $0x50] sm:$0xff]  ;;  %v183_v39 = vld [vmem:[#allocation8 + $0x48] sm:$0xff]  ;;  %v182_v40 = vld [vmem:[#allocation8 + $0x40] sm:$0xff] }
  0x21   :  { %157 = vmatpush.msra.mxu1 %v140_v15  ;;  %195 = vmatpush.msra.mxu2 %v188_v34  ;;  %v181_v41 = vld [vmem:[#allocation8 + $0x38] sm:$0xff]  ;;  %v180_v42 = vld [vmem:[#allocation8 + $0x30] sm:$0xff]  ;;  %v179_v43 = vld [vmem:[#allocation8 + $0x28] sm:$0xff] }
  0x22   :  { %116 = vmatpush.msra.mxu0 %v97_v12  ;;  %v241_v44 = vld [vmem:[%s445_s2] ss:$0 sm:$0xff]  ;;  %v178_v49 = vld [vmem:[#allocation8 + $0x20] sm:$0xff]  ;;  %v176_v51 = vld [vmem:[#allocation8 + $0x10] sm:$0xff] }
  0x23   :  { %158 = vmatpush.msra.mxu1 %v139_v17  ;;  %196 = vmatpush.msra.mxu2 %v187_v35  ;;  %v177_v50 = vld [vmem:[#allocation8 + $0x18] sm:$0xff]  ;;  %v175_v52 = vld [vmem:[#allocation8 + $0x8] sm:$0xff]  ;;  %v174_v53 = vld [vmem:[#allocation8] sm:$0xff] }
  0x24   :  { %117 = vmatpush.msra.mxu0 %v96_v14  ;;  %v242_v54 = vld [vmem:[%s447_s4] ss:$0 sm:$0xff] }
  0x25   :  { %159 = vmatpush.msra.mxu1 %v138_v19  ;;  %197 = vmatpush.msra.mxu2 %v186_v36  ;;  %v243_v60 = vld [vmem:[%s449_s6] ss:$0 sm:$0xff] }
  0x26   :  { %118 = vmatpush.msra.mxu0 %v95_v16 }
  0x27   :  { %160 = vmatpush.msra.mxu1 %v137_v21  ;;  %198 = vmatpush.msra.mxu2 %v185_v37 }
  0x28   :  { %119 = vmatpush.msra.mxu0 %v94_v18 }
  0x29   :  { %161 = vmatpush.msra.mxu1 %v136_v23  ;;  %199 = vmatpush.msra.mxu2 %v184_v38 }
  0x2a   :  { %120 = vmatpush.msra.mxu0 %v93_v20 }
  0x2b   :  { %162 = vmatpush.msra.mxu1 %v135_v25  ;;  %200 = vmatpush.msra.mxu2 %v183_v39 }
  0x2c   :  { %121 = vmatpush.msra.mxu0 %v92_v22 }
  0x2d   :  { %163 = vmatpush.msra.mxu1 %v134_v29  ;;  %201 = vmatpush.msra.mxu2 %v182_v40 }
  0x2e   :  { %122 = vmatpush.msra.mxu0 %v91_v24 }
  0x2f   :  { %164 = vmatpush.msra.mxu1 %v133_v30  ;;  %202 = vmatpush.msra.mxu2 %v181_v41 }
  0x30   :  { %123 = vmatpush.msra.mxu0 %v90_v26 }
  0x31   :  { %165 = vmatpush.msra.mxu1 %v132_v31  ;;  %203 = vmatpush.msra.mxu2 %v180_v42 }
  0x32   :  { %124 = vmatpush.msra.mxu0 %v89_v27 }
  0x33   :  { %125 = vmatmul.f32.vlgmr.msra.gmra.mxu0 %v88_v28  ;;  %166 = vmatpush.msra.mxu1 %v131_v32 }
  0x34   :  { %204 = vmatpush.msra.mxu2 %v179_v43 }
  0x36   :  { %205 = vmatpush.msra.mxu2 %v178_v49 }
  0x38   :  { %206 = vmatpush.msra.mxu2 %v177_v50 }
  0x3a   :  { %207 = vmatpush.msra.mxu2 %v176_v51 }
  0x3c   :  { %208 = vmatpush.msra.mxu2 %v175_v52 }
  0x3e   :  { %209 = vmatpush.msra.mxu2 %v174_v53 }
  0xb0   :  { %v126_v45 = vpop.f32.mrf.mxu0 }
  0xb1   :  { %v127_v46 = vadd.f32 %v241_v44, %v126_v45 }
  0xb3   :  { %v129_v47 = vmax.f32 %v127_v46, 0.0 }
  0xb5   :  { %v130_v48 = vadd.f32 %v129_v47, %v88_v28 }
  0xb7   :  { %167 = vmatmul.f32.vlgmr.msra.gmra.mxu1 %v130_v48 }
 0x134   :  { %v168_v55 = vpop.f32.mrf.mxu1 }
 0x135   :  { %v169_v56 = vadd.f32 %v242_v54, %v168_v55 }
 0x137   :  { %v171_v57 = vmax.f32 %v169_v56, 0.0 }
 0x139   :  { %v172_v58 = vadd.f32 %v171_v57, %v129_v47 }
 0x13b   :  { %v173_v59 = vadd.f32 %v172_v58, %v88_v28 }
 0x13d   :  { %210 = vmatmul.f32.vlgmr.msra.gmra.mxu2 %v173_v59 }
 0x1c0   :  { %v211_v61 = vpop.f32.mrf.mxu2 }
 0x1c1   :  { %v212_v62 = vadd.f32 %v243_v60, %v211_v61 }
 0x1c3   :  { %214 = vst [vmem:[#allocation10] sm:$0xff] %v212_v62 }
 0x1c4   :  { %225 = dma.vmem_to_hbm [thread:$0]  %s221_s25, 128, %s223_s28, [#allocation4]  }
 0x1c5   :  { %370 = dma.done.wait [#allocation4], 128  }
 0x1c6   :  { %371 = vsyncadd [#allocation4], 4294967168 }
 0x1c7   :  { %230 = vsyncpa [#allocation3], 1 }
 0x1c8   :  { %231 = vsyncpa [#allocation6], 1 }
 0x1c9   :  { %232 = vsyncpa [#allocation9], 1 }
 0x1ca   :  { %233 = vsyncpa [#allocation4], 1 }

</bundles_post_ra>
